<compile_context>
chip_gen: v6e
topology: v6e:2x2x1
jax: 0.10.0
libtpu: 0.0.40
codegen_flags: <defaults>
</compile_context>

<pallas_src>
import functools

import jax
import jax.numpy as jnp
from jax.experimental import pallas as pl
from jax.experimental.pallas import tpu as pltpu


def _gat_kernel(x_hbm, w_hbm, bias_ref, adj_ref, pool_ref, out_ref,
                x_vmem, w_vmem, proj_scr, asrc_scr, adst_scr, node_scr,
                copy_sem, *, num_heads, channels):
    H, C = num_heads, channels
    HC = H * C
    i = pl.program_id(0)
    tq = adj_ref.shape[0]

    # ---- Step 0: one-time DMA of grid-invariant operands + fused projection.
    @pl.when(i == 0)
    def _():
        cx = pltpu.make_async_copy(x_hbm, x_vmem, copy_sem.at[0])
        cw = pltpu.make_async_copy(w_hbm, w_vmem, copy_sem.at[1])
        cx.start()
        cw.start()
        cx.wait()
        cw.wait()
        # Fused projection: x @ [W_all | w_src | w_dst]  ->  [N, H*C + 2H]
        # (kept in f32: the folded attention logits feed exp()).
        proj0 = jnp.dot(x_vmem[...], w_vmem[...],
                        preferred_element_type=jnp.float32)
        proj_scr[...] = proj0[:, :HC]                     # per-head features
        asrc_scr[...] = proj0[:, HC:HC + H].T             # [H, N] source logits
        adst_scr[...] = proj0[:, HC + H:HC + 2 * H]       # [N, H] target logits
        # Output block is resident across the whole grid -> zero it once.
        out_ref[...] = jnp.zeros_like(out_ref)

    # ---- Target rows handled by this grid step.
    row0 = pl.multiple_of(i * tq, tq)
    mask = adj_ref[...] != 0                              # int8 -> bool [tq, N]
    a_dst_tile = adst_scr[pl.ds(row0, tq), :]             # [tq, H]

    for h in range(H):                                    # H is small & static
        hh = proj_scr[:, h * C:(h + 1) * C]               # [N, C] ref slice
        a_dst = a_dst_tile[:, h:h + 1]                    # [tq, 1]
        a_src = asrc_scr[h:h + 1, :]                      # [1, N]

        # e[i, j] = LeakyReLU(a_dst[i] + a_src[j], 0.2), adjacency-masked once.
        # Keep in f32: the -1e30 sentinel overflows bf16.
        e = a_dst + a_src                                 # [tq, N]
        e = jnp.where(mask, jnp.maximum(e, 0.2 * e), -1e30)

        # Softmax over incoming edges j. Self-loops (add_self_loops=True)
        # guarantee a finite row max, so masked exps underflow to exactly 0.
        m = jnp.max(e, axis=-1, keepdims=True)
        p = jnp.exp(e - m)
        denom = jnp.sum(p, axis=-1, keepdims=True)

        # bf16 MXU matmul with DEFERRED normalization: scale the [tq, C]
        # result instead of the [tq, N] probabilities (row scaling commutes).
        pv = jnp.dot(p.astype(jnp.bfloat16), hh.astype(jnp.bfloat16),
                     preferred_element_type=jnp.float32)  # [tq, C]
        node_scr[:, h * C:(h + 1) * C] = pv * pl.reciprocal(denom, approx=True)

    # Bias + ELU once over the full lane-dense [tq, H*C] slab.
    node = node_scr[...] + bias_ref[...]
    node = jnp.where(node > 0, node, jnp.exp(jnp.minimum(node, 0.0)) - 1.0)

    # Partial global_mean_pool contribution of this row tile (accumulated).
    out_ref[...] += jnp.dot(pool_ref[...].astype(jnp.bfloat16),
                            node.astype(jnp.bfloat16),
                            preferred_element_type=jnp.float32)


def _choose_row_tile(N, F, H, C, G, budget_bytes):
    """Largest row tile (multiple of 8, dividing N) fitting the VMEM budget."""
    HC = H * C
    # tq-independent VMEM: single-buffered x / fused-weight copies + f32 scratch.
    fixed = 4 * (N * F + F * (HC + 2 * H) + N * HC + H * N + N * H)
    # Per-row cost: double-buffered int8 adjacency tile, double-buffered f32
    # pooling columns, per-tile node-feature scratch.
    per_row = 2 * N + 2 * G * 4 + HC * 4
    cap = (budget_bytes - fixed) // per_row
    if cap >= N:
        return N
    cap = max(8, int(cap))
    cap -= cap % 8
    for t in range(cap, 7, -8):
        if N % t == 0:
            return t
    return N  # fall back to a single tile


def gat_batch_forward(x, w, att_src, att_dst, bias, adj, pool_norm,
                      *, row_tile=None, vmem_budget_bytes=44 * 1024 * 1024):
    N, F = x.shape
    H, _, C = w.shape
    HC = H * C
    G = pool_norm.shape[0]

    # Fold everything into ONE matmul operand:
    #   cols [0, H*C)         -> per-head projected features (PyG concat order)
    #   cols [H*C, H*C+H)     -> a_src per head
    #   cols [H*C+H, H*C+2H)  -> a_dst per head
    w_all = jnp.transpose(w, (1, 0, 2)).reshape(F, HC)          # [F, H*C]
    w_src = jnp.einsum('hfc,hc->fh', w, att_src[:, 0, :])       # [F, H]
    w_dst = jnp.einsum('hfc,hc->fh', w, att_dst[:, 0, :])       # [F, H]
    w_aug = jnp.concatenate([w_all, w_src, w_dst], axis=1)      # [F, H*C + 2H]
    bias_flat = bias.reshape(1, HC)

    adj_i8 = adj.astype(jnp.int8)   # 4x smaller DMA / VMEM than f32 adjacency

    tq = _choose_row_tile(N, F, H, C, G, vmem_budget_bytes) \
        if row_tile is None else row_tile
    assert N % tq == 0, "row tile must divide N"
    grid = (N // tq,)

    out = pl.pallas_call(
        functools.partial(_gat_kernel, num_heads=H, channels=C),
        out_shape=jax.ShapeDtypeStruct((G, HC), jnp.float32),
        grid_spec=pltpu.PrefetchScalarGridSpec(
            num_scalar_prefetch=0,
            grid=grid,
            in_specs=[
                # x and the fused weights are read exactly once (step 0):
                # keep them in HBM and DMA manually -> single VMEM buffer.
                pl.BlockSpec(memory_space=pl.ANY),                 # x
                pl.BlockSpec(memory_space=pl.ANY),                 # fused weights
                pl.BlockSpec((1, HC), lambda i: (0, 0)),           # bias (flat)
                # If the adjacency DMA is exposed on v5e, raise this spec's
                # pipeline depth (pipeline_mode=pl.Buffered(3)).
                pl.BlockSpec((tq, N), lambda i: (i, 0)),           # int8 adj tile
                pl.BlockSpec((G, tq), lambda i: (0, i)),           # pooling cols
            ],
            out_specs=pl.BlockSpec((G, HC), lambda i: (0, 0)),     # pooled output
            scratch_shapes=[
                pltpu.VMEM((N, F), x.dtype),               # x copy (single-buffered)
                pltpu.VMEM((F, HC + 2 * H), jnp.float32),  # fused weights copy
                pltpu.VMEM((N, HC), jnp.float32),          # projection (carried)
                pltpu.VMEM((H, N), jnp.float32),           # a_src^T (carried)
                pltpu.VMEM((N, H), jnp.float32),           # a_dst   (carried)
                pltpu.VMEM((tq, HC), jnp.float32),         # per-tile node feats
                pltpu.SemaphoreType.DMA((2,)),             # step-0 copy sems
            ],
        ),
        # The pooled output is accumulated across row tiles -> this axis must
        # stay "arbitrary" (sequential).  A per-tile partial-pool output (or a
        # leading size-2 "parallel" axis) would enable v7x dual-TC sharding.
        compiler_params=pltpu.CompilerParams(
            dimension_semantics=("arbitrary",),
            vmem_limit_bytes=64 * 1024 * 1024),
    )(x, w_aug, bias_flat, adj_i8, pool_norm)

    # F.dropout with training=False is identity.
    return out                                                   # [G, H*C]


def _reference(x, w, att_src, att_dst, bias, adj, pool_norm):
    H = w.shape[0]
    outs = []
    for hi in range(H):
        h = x @ w[hi]
        a_src = (h * att_src[hi]).sum(-1, keepdims=True)
        a_dst = (h * att_dst[hi]).sum(-1, keepdims=True)
        e = a_dst + a_src.T
        e = jnp.where(e > 0, e, 0.2 * e)
        e = jnp.where(adj > 0, e, -1e30)
        e = e - e.max(-1, keepdims=True)
        p = jnp.where(adj > 0, jnp.exp(e), 0.0)
        alpha = p / p.sum(-1, keepdims=True)
        o = alpha @ h + bias[hi]
        o = jnp.where(o > 0, o, jnp.exp(o) - 1.0)
        outs.append(pool_norm @ o)
    out = jnp.stack(outs, 0)
    return jnp.transpose(out, (1, 0, 2)).reshape(pool_norm.shape[0], -1)


if __name__ == "__main__":
    # Small shapes consistent with GATBatch(num_node_features=8,
    # hidden_channels=8, num_heads=2): two graphs of 8 nodes each.
    N, F, C, H, G = 16, 8, 8, 2, 2

    key = jax.random.PRNGKey(0)
    k1, k2, k3, k4, k5 = jax.random.split(key, 5)
    W = jax.random.normal(k1, (H, F, C), jnp.float32) / jnp.sqrt(F)
    att_src = 0.1 * jax.random.normal(k2, (H, 1, C), jnp.float32)
    att_dst = 0.1 * jax.random.normal(k3, (H, 1, C), jnp.float32)
    bias = 0.1 * jax.random.normal(k5, (H, 1, C), jnp.float32)
    x = jax.random.normal(k4, (N, F), jnp.float32)

    # Deterministic graph: bidirectional ring inside each of the 2 graphs.
    src, dst = [], []
    for g in range(G):
        off = g * (N // G)
        n_g = N // G
        for i in range(n_g):
            j = (i + 1) % n_g
            src += [off + i, off + j]
            dst += [off + j, off + i]
    edge_index = jnp.array([src, dst], dtype=jnp.int32)
    batch = jnp.repeat(jnp.arange(G, dtype=jnp.int32), N // G)

    # Dense adjacency (message j -> i) with self loops.
    adj = jnp.zeros((N, N), jnp.float32)
    adj = adj.at[edge_index[1], edge_index[0]].set(1.0)
    adj = adj.at[jnp.arange(N), jnp.arange(N)].set(1.0)

    # Row-normalized pooling matrix: pooled = pool_norm @ node_features.
    onehot = (batch[None, :] == jnp.arange(G)[:, None]).astype(jnp.float32)
    pool_norm = onehot / onehot.sum(axis=1, keepdims=True)

    out = gat_batch_forward(x, W, att_src, att_dst, bias, adj, pool_norm)
    out = jax.block_until_ready(out)

    ref = _reference(x, W, att_src, att_dst, bias, adj, pool_norm)
    # Tolerance reflects bf16 MXU matmuls + EUP approximate reciprocal in the
    # kernel (the reference runs fully in f32).
    if not jnp.allclose(out, ref, rtol=2e-2, atol=2e-2):
        raise AssertionError("Pallas GAT output mismatch vs JAX reference")

    print("KERNEL_OK")
</pallas_src>

<mosaic_0001>
module attributes {stable_mosaic.version = 11 : i64} {
  func.func @_gat_kernel(%arg0: i32, %arg1: memref<16x8xf32, #tpu.memory_space<any>>, %arg2: memref<8x20xf32, #tpu.memory_space<any>>, %arg3: memref<1x16xf32, #tpu.memory_space<vmem>>, %arg4: memref<16x16xi8, #tpu.memory_space<vmem>>, %arg5: memref<2x16xf32, #tpu.memory_space<vmem>>, %arg6: memref<2x16xf32, #tpu.memory_space<vmem>>, %arg7: memref<16x8xf32, #tpu.memory_space<vmem>>, %arg8: memref<8x20xf32, #tpu.memory_space<vmem>>, %arg9: memref<16x16xf32, #tpu.memory_space<vmem>>, %arg10: memref<2x16xf32, #tpu.memory_space<vmem>>, %arg11: memref<16x2xf32, #tpu.memory_space<vmem>>, %arg12: memref<16x16xf32, #tpu.memory_space<vmem>>, %arg13: memref<2x!tpu.dma_semaphore, #tpu.memory_space<semaphore_mem>>) attributes {dimension_semantics = [#tpu.dimension_semantics<arbitrary>], iteration_bounds = array<i64: 1>, scalar_prefetch = 0 : i64, scratch_operands = 7 : i64, tpu.core_type = #tpu.core_type<tc>, window_params = [{}, {}, {pipeline_mode = #tpu.pipeline_mode<synchronous>, transform_indices = @transform_2, window_bounds = array<i64: 1, 16>}, {transform_indices = @transform_3, window_bounds = array<i64: 16, 16>}, {transform_indices = @transform_4, window_bounds = array<i64: 2, 16>}, {pipeline_mode = #tpu.pipeline_mode<synchronous>, transform_indices = @transform_5, window_bounds = array<i64: 2, 16>}]} {
    %c0_i32 = arith.constant 0 : i32
    %0 = arith.cmpi eq, %arg0, %c0_i32 : i32
    %1 = arith.extui %0 : i1 to i32
    %c0_i32_0 = arith.constant 0 : i32
    %2 = arith.cmpi ne, %1, %c0_i32_0 : i32
    scf.if %2 {
      %c0_i32_36 = arith.constant 0 : i32
      %79 = tpu.memref_slice %arg13[%c0_i32_36] : memref<2x!tpu.dma_semaphore, #tpu.memory_space<semaphore_mem>> -> memref<1x!tpu.dma_semaphore, #tpu.memory_space<semaphore_mem>>
      %80 = tpu.memref_squeeze %79 : memref<1x!tpu.dma_semaphore, #tpu.memory_space<semaphore_mem>> -> memref<!tpu.dma_semaphore, #tpu.memory_space<semaphore_mem>>
      tpu.enqueue_dma source(%arg1 : memref<16x8xf32, #tpu.memory_space<any>>) target(%arg7 : memref<16x8xf32, #tpu.memory_space<vmem>>) target_semaphore(%80 : memref<!tpu.dma_semaphore, #tpu.memory_space<semaphore_mem>>)
      %c1_i32 = arith.constant 1 : i32
      %81 = tpu.memref_slice %arg13[%c1_i32] : memref<2x!tpu.dma_semaphore, #tpu.memory_space<semaphore_mem>> -> memref<1x!tpu.dma_semaphore, #tpu.memory_space<semaphore_mem>>
      %82 = tpu.memref_squeeze %81 : memref<1x!tpu.dma_semaphore, #tpu.memory_space<semaphore_mem>> -> memref<!tpu.dma_semaphore, #tpu.memory_space<semaphore_mem>>
      tpu.enqueue_dma source(%arg2 : memref<8x20xf32, #tpu.memory_space<any>>) target(%arg8 : memref<8x20xf32, #tpu.memory_space<vmem>>) target_semaphore(%82 : memref<!tpu.dma_semaphore, #tpu.memory_space<semaphore_mem>>)
      %c0_i32_37 = arith.constant 0 : i32
      %83 = tpu.memref_slice %arg13[%c0_i32_37] : memref<2x!tpu.dma_semaphore, #tpu.memory_space<semaphore_mem>> -> memref<1x!tpu.dma_semaphore, #tpu.memory_space<semaphore_mem>>
      %84 = tpu.memref_squeeze %83 : memref<1x!tpu.dma_semaphore, #tpu.memory_space<semaphore_mem>> -> memref<!tpu.dma_semaphore, #tpu.memory_space<semaphore_mem>>
      tpu.wait_dma2 semaphore(%84 : memref<!tpu.dma_semaphore, #tpu.memory_space<semaphore_mem>>) src(%arg1 : memref<16x8xf32, #tpu.memory_space<any>>) dst(%arg7 : memref<16x8xf32, #tpu.memory_space<vmem>>)
      %c1_i32_38 = arith.constant 1 : i32
      %85 = tpu.memref_slice %arg13[%c1_i32_38] : memref<2x!tpu.dma_semaphore, #tpu.memory_space<semaphore_mem>> -> memref<1x!tpu.dma_semaphore, #tpu.memory_space<semaphore_mem>>
      %86 = tpu.memref_squeeze %85 : memref<1x!tpu.dma_semaphore, #tpu.memory_space<semaphore_mem>> -> memref<!tpu.dma_semaphore, #tpu.memory_space<semaphore_mem>>
      tpu.wait_dma2 semaphore(%86 : memref<!tpu.dma_semaphore, #tpu.memory_space<semaphore_mem>>) src(%arg2 : memref<8x20xf32, #tpu.memory_space<any>>) dst(%arg8 : memref<8x20xf32, #tpu.memory_space<vmem>>)
      %c0_39 = arith.constant 0 : index
      %c0_40 = arith.constant 0 : index
      %87 = vector.load %arg7[%c0_39, %c0_40] : memref<16x8xf32, #tpu.memory_space<vmem>>, vector<16x8xf32>
      %c0_41 = arith.constant 0 : index
      %c0_42 = arith.constant 0 : index
      %88 = vector.load %arg8[%c0_41, %c0_42] : memref<8x20xf32, #tpu.memory_space<vmem>>, vector<8x20xf32>
      %cst_43 = arith.constant dense<0.000000e+00> : vector<16x20xf32>
      %89 = tpu.matmul %87, %88, %cst_43 {dimension_numbers = #tpu.dot_dimension_numbers<[1], [0], [0], [1], [0, 0, 1, 1], [], []>} : vector<16x8xf32>, vector<8x20xf32>, vector<16x20xf32> -> vector<16x20xf32>
      %90 = vector.extract_strided_slice %89 {offsets = [0, 0], sizes = [16, 16], strides = [1, 1]} : vector<16x20xf32> to vector<16x16xf32>
      %c0_44 = arith.constant 0 : index
      %c0_45 = arith.constant 0 : index
      %91 = vector.load %arg9[%c0_44, %c0_45] : memref<16x16xf32, #tpu.memory_space<vmem>>, vector<16x16xf32>
      tpu.vector_store %arg9[%c0_44, %c0_45], %90 {strides = array<i32>} : memref<16x16xf32, #tpu.memory_space<vmem>>, vector<16x16xf32>,
      %92 = vector.extract_strided_slice %89 {offsets = [0, 16], sizes = [16, 2], strides = [1, 1]} : vector<16x20xf32> to vector<16x2xf32>
      %93 = tpu.transpose %92, [1, 0] : vector<16x2xf32> -> vector<2x16xf32>
      %c0_46 = arith.constant 0 : index
      %c0_47 = arith.constant 0 : index
      %94 = vector.load %arg10[%c0_46, %c0_47] : memref<2x16xf32, #tpu.memory_space<vmem>>, vector<2x16xf32>
      tpu.vector_store %arg10[%c0_46, %c0_47], %93 {strides = array<i32>} : memref<2x16xf32, #tpu.memory_space<vmem>>, vector<2x16xf32>,
      %95 = vector.extract_strided_slice %89 {offsets = [0, 18], sizes = [16, 2], strides = [1, 1]} : vector<16x20xf32> to vector<16x2xf32>
      %c0_48 = arith.constant 0 : index
      %c0_49 = arith.constant 0 : index
      %96 = vector.load %arg11[%c0_48, %c0_49] : memref<16x2xf32, #tpu.memory_space<vmem>>, vector<16x2xf32>
      tpu.vector_store %arg11[%c0_48, %c0_49], %95 {strides = array<i32>} : memref<16x2xf32, #tpu.memory_space<vmem>>, vector<16x2xf32>,
      %cst_50 = arith.constant 0.000000e+00 : f32
      %97 = vector.broadcast %cst_50 : f32 to vector<2x16xf32>
      %c0_51 = arith.constant 0 : index
      %c0_52 = arith.constant 0 : index
      %98 = vector.load %arg6[%c0_51, %c0_52] : memref<2x16xf32, #tpu.memory_space<vmem>>, vector<2x16xf32>
      tpu.vector_store %arg6[%c0_51, %c0_52], %97 {strides = array<i32>} : memref<2x16xf32, #tpu.memory_space<vmem>>, vector<2x16xf32>,
    } else {
    }
    %c16_i32 = arith.constant 16 : i32
    %3 = arith.muli %arg0, %c16_i32 : i32
    %4 = tpu.assume_multiple %3, 16 : i32
    %c0 = arith.constant 0 : index
    %c0_1 = arith.constant 0 : index
    %5 = vector.load %arg4[%c0, %c0_1] : memref<16x16xi8, #tpu.memory_space<vmem>>, vector<16x16xi8>
    %c0_i8 = arith.constant 0 : i8
    %6 = vector.broadcast %c0_i8 : i8 to vector<16x16xi8>
    %7 = arith.cmpi ne, %5, %6 : vector<16x16xi8>
    %8 = arith.index_cast %4 : i32 to index
    %c0_2 = arith.constant 0 : index
    %9 = vector.load %arg11[%8, %c0_2] : memref<16x2xf32, #tpu.memory_space<vmem>>, vector<16x2xf32>
    %c0_3 = arith.constant 0 : index
    %c0_4 = arith.constant 0 : index
    %10 = vector.load %arg9[%c0_3, %c0_4] : memref<16x16xf32, #tpu.memory_space<vmem>>, vector<16x8xf32>
    %11 = vector.extract_strided_slice %9 {offsets = [0, 0], sizes = [16, 1], strides = [1, 1]} : vector<16x2xf32> to vector<16x1xf32>
    %c0_5 = arith.constant 0 : index
    %c0_6 = arith.constant 0 : index
    %12 = vector.load %arg10[%c0_5, %c0_6] : memref<2x16xf32, #tpu.memory_space<vmem>>, vector<1x16xf32>
    %13 = vector.broadcast %11 : vector<16x1xf32> to vector<16x16xf32>
    %14 = vector.broadcast %12 : vector<1x16xf32> to vector<16x16xf32>
    %15 = arith.addf %13, %14 : vector<16x16xf32>
    %cst = arith.constant 2.000000e-01 : f32
    %16 = vector.broadcast %cst : f32 to vector<16x16xf32>
    %17 = arith.mulf %16, %15 : vector<16x16xf32>
    %18 = arith.maximumf %15, %17 : vector<16x16xf32>
    %cst_7 = arith.constant -1.000000e+30 : f32
    %19 = vector.broadcast %cst_7 : f32 to vector<16x16xf32>
    %20 = arith.select %7, %18, %19 : vector<16x16xi1>, vector<16x16xf32>
    %cst_8 = arith.constant dense<0xFF800000> : vector<16xf32>
    %21 = vector.multi_reduction <maximumf>, %20, %cst_8 [1] : vector<16x16xf32> to vector<16xf32>
    %22 = vector.shape_cast %21 : vector<16xf32> to vector<16x1xf32>
    %23 = vector.broadcast %22 : vector<16x1xf32> to vector<16x16xf32>
    %24 = arith.subf %20, %23 : vector<16x16xf32>
    %25 = math.exp %24 : vector<16x16xf32>
    %cst_9 = arith.constant dense<0.000000e+00> : vector<16xf32>
    %26 = vector.multi_reduction <add>, %25, %cst_9 [1] : vector<16x16xf32> to vector<16xf32>
    %27 = vector.shape_cast %26 : vector<16xf32> to vector<16x1xf32>
    %28 = arith.truncf %25 : vector<16x16xf32> to vector<16x16xbf16>
    %29 = arith.truncf %10 : vector<16x8xf32> to vector<16x8xbf16>
    %cst_10 = arith.constant dense<0.000000e+00> : vector<16x8xf32>
    %30 = tpu.matmul %28, %29, %cst_10 {dimension_numbers = #tpu.dot_dimension_numbers<[1], [0], [0], [1], [0, 0, 1, 1], [], []>} : vector<16x16xbf16>, vector<16x8xbf16>, vector<16x8xf32> -> vector<16x8xf32>
    %31 = tpu.reciprocal %27 {approx = true} : vector<16x1xf32> -> vector<16x1xf32>
    %32 = vector.broadcast %31 : vector<16x1xf32> to vector<16x8xf32>
    %33 = arith.mulf %30, %32 : vector<16x8xf32>
    %c0_11 = arith.constant 0 : index
    %c0_12 = arith.constant 0 : index
    %34 = vector.load %arg12[%c0_11, %c0_12] : memref<16x16xf32, #tpu.memory_space<vmem>>, vector<16x8xf32>
    tpu.vector_store %arg12[%c0_11, %c0_12], %33 {strides = array<i32>} : memref<16x16xf32, #tpu.memory_space<vmem>>, vector<16x8xf32>,
    %c0_13 = arith.constant 0 : index
    %c8 = arith.constant 8 : index
    %35 = vector.load %arg9[%c0_13, %c8] : memref<16x16xf32, #tpu.memory_space<vmem>>, vector<16x8xf32>
    %36 = vector.extract_strided_slice %9 {offsets = [0, 1], sizes = [16, 1], strides = [1, 1]} : vector<16x2xf32> to vector<16x1xf32>
    %c1 = arith.constant 1 : index
    %c0_14 = arith.constant 0 : index
    %37 = vector.load %arg10[%c1, %c0_14] : memref<2x16xf32, #tpu.memory_space<vmem>>, vector<1x16xf32>
    %38 = vector.broadcast %36 : vector<16x1xf32> to vector<16x16xf32>
    %39 = vector.broadcast %37 : vector<1x16xf32> to vector<16x16xf32>
    %40 = arith.addf %38, %39 : vector<16x16xf32>
    %cst_15 = arith.constant 2.000000e-01 : f32
    %41 = vector.broadcast %cst_15 : f32 to vector<16x16xf32>
    %42 = arith.mulf %41, %40 : vector<16x16xf32>
    %43 = arith.maximumf %40, %42 : vector<16x16xf32>
    %cst_16 = arith.constant -1.000000e+30 : f32
    %44 = vector.broadcast %cst_16 : f32 to vector<16x16xf32>
    %45 = arith.select %7, %43, %44 : vector<16x16xi1>, vector<16x16xf32>
    %cst_17 = arith.constant dense<0xFF800000> : vector<16xf32>
    %46 = vector.multi_reduction <maximumf>, %45, %cst_17 [1] : vector<16x16xf32> to vector<16xf32>
    %47 = vector.shape_cast %46 : vector<16xf32> to vector<16x1xf32>
    %48 = vector.broadcast %47 : vector<16x1xf32> to vector<16x16xf32>
    %49 = arith.subf %45, %48 : vector<16x16xf32>
    %50 = math.exp %49 : vector<16x16xf32>
    %cst_18 = arith.constant dense<0.000000e+00> : vector<16xf32>
    %51 = vector.multi_reduction <add>, %50, %cst_18 [1] : vector<16x16xf32> to vector<16xf32>
    %52 = vector.shape_cast %51 : vector<16xf32> to vector<16x1xf32>
    %53 = arith.truncf %50 : vector<16x16xf32> to vector<16x16xbf16>
    %54 = arith.truncf %35 : vector<16x8xf32> to vector<16x8xbf16>
    %cst_19 = arith.constant dense<0.000000e+00> : vector<16x8xf32>
    %55 = tpu.matmul %53, %54, %cst_19 {dimension_numbers = #tpu.dot_dimension_numbers<[1], [0], [0], [1], [0, 0, 1, 1], [], []>} : vector<16x16xbf16>, vector<16x8xbf16>, vector<16x8xf32> -> vector<16x8xf32>
    %56 = tpu.reciprocal %52 {approx = true} : vector<16x1xf32> -> vector<16x1xf32>
    %57 = vector.broadcast %56 : vector<16x1xf32> to vector<16x8xf32>
    %58 = arith.mulf %55, %57 : vector<16x8xf32>
    %c0_20 = arith.constant 0 : index
    %c8_21 = arith.constant 8 : index
    %59 = vector.load %arg12[%c0_20, %c8_21] : memref<16x16xf32, #tpu.memory_space<vmem>>, vector<16x8xf32>
    tpu.vector_store %arg12[%c0_20, %c8_21], %58 {strides = array<i32>} : memref<16x16xf32, #tpu.memory_space<vmem>>, vector<16x8xf32>,
    %c0_22 = arith.constant 0 : index
    %c0_23 = arith.constant 0 : index
    %60 = vector.load %arg12[%c0_22, %c0_23] : memref<16x16xf32, #tpu.memory_space<vmem>>, vector<16x16xf32>
    %c0_24 = arith.constant 0 : index
    %c0_25 = arith.constant 0 : index
    %61 = vector.load %arg3[%c0_24, %c0_25] : memref<1x16xf32, #tpu.memory_space<vmem>>, vector<1x16xf32>
    %62 = vector.broadcast %61 : vector<1x16xf32> to vector<16x16xf32>
    %63 = arith.addf %60, %62 : vector<16x16xf32>
    %cst_26 = arith.constant 0.000000e+00 : f32
    %64 = vector.broadcast %cst_26 : f32 to vector<16x16xf32>
    %65 = arith.cmpf ogt, %63, %64 : vector<16x16xf32>
    %cst_27 = arith.constant 0.000000e+00 : f32
    %66 = vector.broadcast %cst_27 : f32 to vector<16x16xf32>
    %67 = arith.minimumf %63, %66 : vector<16x16xf32>
    %68 = math.exp %67 : vector<16x16xf32>
    %cst_28 = arith.constant 1.000000e+00 : f32
    %69 = vector.broadcast %cst_28 : f32 to vector<16x16xf32>
    %70 = arith.subf %68, %69 : vector<16x16xf32>
    %71 = arith.select %65, %63, %70 : vector<16x16xi1>, vector<16x16xf32>
    %c0_29 = arith.constant 0 : index
    %c0_30 = arith.constant 0 : index
    %72 = vector.load %arg6[%c0_29, %c0_30] : memref<2x16xf32, #tpu.memory_space<vmem>>, vector<2x16xf32>
    %c0_31 = arith.constant 0 : index
    %c0_32 = arith.constant 0 : index
    %73 = vector.load %arg5[%c0_31, %c0_32] : memref<2x16xf32, #tpu.memory_space<vmem>>, vector<2x16xf32>
    %74 = arith.truncf %73 : vector<2x16xf32> to vector<2x16xbf16>
    %75 = arith.truncf %71 : vector<16x16xf32> to vector<16x16xbf16>
    %cst_33 = arith.constant dense<0.000000e+00> : vector<2x16xf32>
    %76 = tpu.matmul %74, %75, %cst_33 {dimension_numbers = #tpu.dot_dimension_numbers<[1], [0], [0], [1], [0, 0, 1, 1], [], []>} : vector<2x16xbf16>, vector<16x16xbf16>, vector<2x16xf32> -> vector<2x16xf32>
    %77 = arith.addf %72, %76 : vector<2x16xf32>
    %c0_34 = arith.constant 0 : index
    %c0_35 = arith.constant 0 : index
    %78 = vector.load %arg6[%c0_34, %c0_35] : memref<2x16xf32, #tpu.memory_space<vmem>>, vector<2x16xf32>
    tpu.vector_store %arg6[%c0_34, %c0_35], %77 {strides = array<i32>} : memref<2x16xf32, #tpu.memory_space<vmem>>, vector<2x16xf32>,
    return
  }
  func.func @transform_2(%arg0: i32) -> (i32, i32) {
    %c0_i32 = arith.constant 0 : i32
    %c0_i32_0 = arith.constant 0 : i32
    %c0_i32_1 = arith.constant 0 : i32
    return %c0_i32, %c0_i32_0 : i32, i32
  }
  func.func @transform_3(%arg0: i32) -> (i32, i32) {
    %c0_i32 = arith.constant 0 : i32
    %c0_i32_0 = arith.constant 0 : i32
    return %arg0, %c0_i32 : i32, i32
  }
  func.func @transform_4(%arg0: i32) -> (i32, i32) {
    %c0_i32 = arith.constant 0 : i32
    %c0_i32_0 = arith.constant 0 : i32
    return %c0_i32, %arg0 : i32, i32
  }
  func.func @transform_5(%arg0: i32) -> (i32, i32) {
    %c0_i32 = arith.constant 0 : i32
    %c0_i32_0 = arith.constant 0 : i32
    %c0_i32_1 = arith.constant 0 : i32
    return %c0_i32, %c0_i32_0 : i32, i32
  }
}

</mosaic_0001>

<bundles_post_ra>
// kernel: tpu_custom_call.1
= control target key start
LH: loop header
LB: loop body
LE: loop exit
PB: predicated region body
PF: predicated region fallthrough
CT: control target
= control target key end

     0   :  { %10 = vsyncpa [#allocation10], 0  ;;  %s796_s0 = inlined_call_operand.vmem [shape: f32[16,8], index: 0, kind: input, shape index: {}]   ;;  %s797_s1 = inlined_call_operand.vmem [shape: f32[8,20], index: 1, kind: input, shape index: {}]   ;;  %s798_s2 = inlined_call_operand.vmem [shape: f32[1,16], index: 2, kind: input, shape index: {}]   ;;  %s799_s3 = inlined_call_operand.vmem [shape: s8[16,16], index: 3, kind: input, shape index: {}]   ;;  %s800_s4 = inlined_call_operand.vmem [shape: f32[2,16], index: 4, kind: input, shape index: {}]   ;;  %s801_s5 = inlined_call_operand.hbm [shape: f32[2,16], index: 5, kind: output, shape index: {}]  }
   0x1   :  { %v57_v0 = vld [vmem:[%s796_s0] sm:$0xff]  ;;  %v59_v1 = vld [vmem:[%s796_s0 + $0x8] sm:$0xff] }
   0x2   :  { %68 = vsyncadd [#allocation8], 256  ;;  %v103_v2 = vld [vmem:[%s797_s1] sm:$0xff] }
   0x3   :  { %112 = vsyncadd [#allocation8 + $0x1], 128 }
   0x4   :  { %689 = dma.done.wait [#allocation8], 256 }
   0x5   :  { %690 = vsyncadd [#allocation8], 4294967040  ;;  %613 = vmatprep.subr.mxu0 %v103_v2  ;;  %vm122_vm0 = vcmask 64512  }
   0x6   :  { %691 = dma.done.wait [#allocation8 + $0x1], 128 }
   0x7   :  { %692 = vsyncadd [#allocation8 + $0x1], 4294967168  ;;  %614 = vmatpush3.msra.mxu0 %v103_v2  ;;  %615 = vmatprep.mubr.msk.f32.mxu0 %vm122_vm0, %v57_v0  ;;  %v695_v3 = vmov 0.0   ;;  %v696_v4 = vmov 1   ;;  %vm204_vm1 = vcmask 130048   ;;  %s697_s0 = smov 112  }
   0x8   :  { %616 = vmatmul.mubr.msk.f32.vlgmr.msra.gmra.mxu0 %vm122_vm0, %v59_v1  ;;  %618 = vmatprep.subr.bf16.mxu1 %v695_v3  ;;  %s698_s1 = smov 110   ;;  %vm255_vm2 = vcmask 15360   ;;  %v699_v14 = vmov 0   ;;  %vm247_vm3 = vcmask 123904   ;;  %v261_v18 = vld [vmem:[%s799_s3 + $0x2] sm:$0x3] }
   0x9   :  { %624 = vmatprep.subr.bf16.mxu0 %v695_v3  ;;  %645 = vset.pattern.permute.xlu0 %v696_v4  ;;  %258 = vst.msk [vmem:[#allocation9] sm:$0x3] %vm247_vm3, %v695_v3  ;;  %v260_v19 = vld [vmem:[%s799_s3] sm:$0x3]  ;;  %vm263_vm4 = vnez %v261_v18  ;;  %vm700_vm8 = vmmov 0   ;;  %s701_s3 = smov 120  }
   0xa   :  { %646 = vset.pattern.permute.xlu1 %v696_v4  ;;  %vm262_vm5 = vnez %v260_v19  ;;  %v291_v22 = vsel %vm263_vm4, 16843009, %v699_v14  ;;  %626 = vmatprep.mubr.msk.bf16.mxu0 %vm700_vm8, %v695_v3  ;;  %s702_s28 = smov 8   ;;  %vm473_vm9 = vcmask 130112  }
   0xb   :  { %v290_v23 = vsel %vm262_vm5, 16843009, %v699_v14  ;;  %v293_v25 = vunpack.c.0.s8 %v291_v22  ;;  %620 = vmatprep.mubr.msk.bf16.mxu1 %vm700_vm8, %v695_v3 }
   0xc   :  { %v292_v27 = vunpack.c.0.s8 %v290_v23 }
   0xd   :  { %vm295_vm6 = vcmp.ne.s32.totalorder %v293_v25, 0 }
   0xe   :  { %vm759_vm7 = vcmp.ne.s32.totalorder %v292_v27, 0 }
  0xc8   :  { %v617_v5 = vpop.f32.mrf.mxu0 }
  0xc9   :  { %206 = vst.msk [vmem:[#allocation4 + $0x8] sm:$0xff] %vm204_vm1, %v617_v5 }
  0xca   :  { %v195_v6 = vpop.f32.mrf.mxu0 }
  0xcb   :  { %205 = vst.msk [vmem:[#allocation4] sm:$0xff] %vm204_vm1, %v195_v6  ;;  %209 = vrot.lane.b32.xlu1 %v195_v6, %s697_s0  ;;  %249 = vrot.lane.b32.xlu0 %v195_v6, %s698_s1 }
  0xcf   :  { %211 = vrot.lane.b32.xlu1 %v617_v5, %s697_s0  ;;  %251 = vrot.lane.b32.xlu0 %v617_v5, %s698_s1 }
  0xd0   :  { %v268_v8 = vld [vmem:[#allocation4 + $0x8] sm:$0xff] }
  0xd2   :  { %v267_v7 = vld [vmem:[#allocation4] sm:$0xff] }
  0xd3   :  { %v318_v9 = vpack.c.bf16 %v268_v8, %v267_v7 }
  0xd5   :  { %619 = vmatpush3.bf16.msra.mxu1 %v318_v9 }
  0xd6   :  { %630 = vmatprep.subr.bf16.mxu1 %v695_v3 }
 0x13d   :  { %v250_v10 = vpop.permute.xlu0 %249  ;;  %v210_v15 = vpop.permute.xlu1 %209 }
 0x13e   :  { %256 = vst.msk [vmem:[#allocation6] sm:$0xff] %vm255_vm2, %v250_v10 }
 0x141   :  { %v252_v11 = vpop.permute.xlu0 %251  ;;  %v212_v16 = vpop.permute.xlu1 %211 }
 0x142   :  { %257 = vst.msk [vmem:[#allocation6 + $0x8] sm:$0xff] %vm255_vm2, %v252_v11 }
 0x145   :  { %v265_v12 = vld [vmem:[#allocation6] sm:$0xff] }
 0x146   :  { %374 = vperm.xlu0 %645, %v265_v12  }
 0x149   :  { %v266_v13 = vld [vmem:[#allocation6 + $0x8] sm:$0xff] }
 0x14a   :  { %378 = vperm.xlu1 %646, %v266_v13   ;;  %647 = vset.pattern.permute.xlu0 %v699_v14 }
 0x14b   :  { %277 = vperm.xlu0 %647, %v266_v13  }
 0x14f   :  { %272 = vperm.xlu0 %647, %v265_v12  }
 0x153   :  { %648 = vset.pattern.permute.xlu0 %v696_v4 }
 0x173   :  { %215 = vxpose.xlu1.b32.start [1/2] (short) (narrow) %v210_v15, 8 }
 0x177   :  { %216 = vxpose.xlu1.b32.end [2/2] (short) (narrow) %v212_v16, 8 }
 0x1c1   :  { %v375_v21 = vpop.permute.xlu0 %374 }
 0x1c5   :  { %v379_v17 = vpop.permute.xlu1 %378 }
 0x1c6   :  { %v278_v24 = vpop.permute.xlu0 %277 }
 0x1ca   :  { %v273_v45 = vpop.permute.xlu0 %272 }
 0x1ef   :  { %v231_v20 = vpop.trf.xlu1 }
 0x1f0   :  { %248 = vst.msk [vmem:[#allocation5] sm:$0x3] %vm247_vm3, %v231_v20 }
 0x1f7   :  { %v596_v26 = vld [vmem:[#allocation5 + $0x1] ss:$0 sm:$0xff]  ;;  %v594_v28 = vld [vmem:[#allocation5] ss:$0 sm:$0xff] }
 0x1f8   :  { %v386_v29 = vadd.f32 %v596_v26, %v379_v17  ;;  %v385_v30 = vadd.f32 %v596_v26, %v375_v21  ;;  %v285_v31 = vadd.f32 %v594_v28, %v278_v24  ;;  %v284_v46 = vadd.f32 %v594_v28, %v273_v45  ;;  %v500_v45 = vld [vmem:[%s800_s4] sm:$0x3] }
 0x1fa   :  { %v388_v32 = vmul.f32 0.2, %v386_v29  ;;  %v387_v33 = vmul.f32 0.2, %v385_v30  ;;  %v287_v34 = vmul.f32 0.2, %v285_v31 }
 0x1fb   :  { %v286_v47 = vmul.f32 0.2, %v284_v46 }
 0x1fc   :  { %v390_v36 = vmax.f32 %v386_v29, %v388_v32  ;;  %v389_v37 = vmax.f32 %v385_v30, %v387_v33  ;;  %v289_v38 = vmax.f32 %v285_v31, %v287_v34  ;;  %v598_v32 = vld [vmem:[%s798_s2] ss:$0 sm:$0xff]  ;;  %s703_s2 = smov [#allocation9]  }
 0x1fd   :  { %v288_v48 = vmax.f32 %v284_v46, %v286_v47  ;;  %s555_s8 = sshll.u32 %s703_s2, 4  ;;  %s556_s8 = int_to_ptr.vmem [resolvable:$true] %s555_s8 }
 0x1fe   :  { %v392_v39 = vsel %vm295_vm6, %v390_v36, -1e+30  ;;  %v391_v40 = vsel %vm759_vm7, %v389_v37, -1e+30  ;;  %v297_v43 = vsel %vm295_vm6, %v289_v38, -1e+30  ;;  %p674_p1 = scmp.lt.s32.totalorder %s556_s8, %s556_s8 }
 0x1ff   :  { %v396_v41 = vsel %vm204_vm1, %v392_v39, -inf  ;;  %v393_v42 = vsel %vm204_vm1, %v391_v40, -inf  ;;  %v302_v44 = vsel %vm204_vm1, %v297_v43, -inf  ;;  %v296_v49 = vsel %vm759_vm7, %v288_v48, -1e+30  ;;  %s669_s9 = scalar_lea.vmem %s556_s8, 32 }
 0x200   :  { %397 = vmax.xlane.f32.xlu1 %v396_v41  ;;  %394 = vmax.xlane.f32.xlu0 %v393_v42  ;;  %v299_v50 = vsel %vm204_vm1, %v296_v49, -inf  ;;  %p670_p0 = scmp.ne.s32.totalorder %s556_s8, %s669_s9  ;;  %p675_p2 = scmp.lt.s32.totalorder %s669_s9, %s669_s9 }
 0x202   :  { %p676_p3 = por %p675_p2, %p674_p1 }
 0x204   :  { %303 = vmax.xlane.f32.xlu1 %v302_v44  ;;  %p677_p4 = pnand %p676_p3, %p670_p0 }
 0x216   :  { %414 = vrot.lane.b32.xlu0 %v318_v9, %s701_s3 }
 0x235   :  { %300 = vmax.xlane.f32.xlu0 %v299_v50  ;;  %v499_v50 = vld [vmem:[#allocation9] sm:$0x3] }
 0x289   :  { %v398_v51 = vpop.xlane.xlu1 %397  ;;  %v395_v52 = vpop.xlane.xlu0 %394 }
 0x28a   :  { %v400_v53 = vsub.f32 %v392_v39, %v398_v51  ;;  %v399_v54 = vsub.f32 %v391_v40, %v395_v52 }
 0x28c   :  { %v403_v55 = vmul.f32 1.442695, %v400_v53  ;;  %v401_v56 = vmul.f32 1.442695, %v399_v54 }
 0x28d   :  { %v304_v57 = vpop.xlane.xlu1 %303  ;;  %v415_v58 = vpop.permute.xlu0 %414 }
 0x28e   :  { %649 = vpow2.f32 %v403_v55  ;;  %v306_v59 = vsub.f32 %v297_v43, %v304_v57  ;;  %625 = vmatpush3.bf16.msra.mxu0 %v415_v58 }
 0x28f   :  { %651 = vpow2.f32 %v401_v56 }
 0x290   :  { %v309_v60 = vmul.f32 1.442695, %v306_v59 }
 0x292   :  { %653 = vpow2.f32 %v309_v60 }
 0x29b   :  { %v650_v61 = vpop.eup %649 }
 0x29c   :  { %v652_v62 = vpop.eup %651  ;;  %v408_v4 = vsel %vm204_vm1, %v650_v61, 0.0 }
 0x29d   :  { %v405_v63 = vsel %vm204_vm1, %v652_v62, 0.0  ;;  %v411_v0 = vpack.c.bf16 %v650_v61, %v652_v62 }
 0x29e   :  { %406 = vadd.xlane.f32.xlu1 %v405_v63 }
 0x29f   :  { %v654_v1 = vpop.eup %653  ;;  %627 = vmatmul.mubr.msk.bf16.vlgmr.msra.gmra.mxu0 %vm204_vm1, %v411_v0 }
 0x2a0   :  { %v314_v2 = vsel %vm204_vm1, %v654_v1, 0.0 }
 0x2a1   :  { %315 = vadd.xlane.f32.xlu0 %v314_v2 }
 0x2a2   :  { %409 = vadd.xlane.f32.xlu1 %v408_v4 }
 0x2be   :  { %v301_v5 = vpop.xlane.xlu0 %300 }
 0x2bf   :  { %v305_v6 = vsub.f32 %v296_v49, %v301_v5  ;;  %v501_v49 = vpack.c.bf16 %v500_v45, %v500_v45 }
 0x2c1   :  { %v307_v7 = vmul.f32 1.442695, %v305_v6 }
 0x2c3   :  { %655 = vpow2.f32 %v307_v7 }
 0x2d0   :  { %v656_v8 = vpop.eup %655 }
 0x2d1   :  { %v311_v9 = vsel %vm204_vm1, %v656_v8, 0.0  ;;  %v317_v10 = vpack.c.bf16 %v654_v1, %v656_v8 }
 0x2d2   :  { %312 = vadd.xlane.f32.xlu1 %v311_v9 }
 0x2d3   :  { %621 = vmatmul.mubr.msk.bf16.vlgmr.msra.gmra.mxu1 %vm204_vm1, %v317_v10 }
 0x2d4   :  { %632 = vmatprep.mubr.msk.bf16.mxu1 %vm700_vm8, %v695_v3 }
 0x327   :  { %v407_v11 = vpop.xlane.xlu1 %406 }
 0x328   :  { %657 = vrcp.f32 %v407_v11 }
 0x32a   :  { %v316_v22 = vpop.xlane.xlu0 %315 }
 0x32b   :  { %v410_v12 = vpop.xlane.xlu1 %409 }
 0x32c   :  { %659 = vrcp.f32 %v410_v12 }
 0x335   :  { %v658_v13 = vpop.eup %657 }
 0x339   :  { %v660_v17 = vpop.eup %659 }
 0x35b   :  { %v313_v21 = vpop.xlane.xlu1 %312 }
 0x35c   :  { %661 = vrcp.f32 %v313_v21 }
 0x35d   :  { %663 = vrcp.f32 %v316_v22 }
 0x35f   :  { %v454_v14 = vpop.f32.mrf.mxu0 }
 0x360   :  { %v463_v15 = vmul.f32 %v658_v13, %v454_v14 }
 0x361   :  { %v628_v16 = vpop.f32.mrf.mxu0 }
 0x362   :  { %467 = vrot.lane.b32.xlu1 %v463_v15, %s702_s28 }
 0x363   :  { %v457_v18 = vpop.f32.mrf.mxu0 }
 0x364   :  { %v464_v19 = vmul.f32 %v660_v17, %v457_v18 }
 0x365   :  { %v629_v20 = vpop.f32.mrf.mxu0 }
 0x366   :  { %469 = vrot.lane.b32.xlu0 %v464_v19, %s702_s28 }
 0x369   :  { %v662_v3 = vpop.eup %661 }
 0x36a   :  { %v664_v26 = vpop.eup %663 }
 0x393   :  { %v356_v23 = vpop.f32.mrf.mxu1 }
 0x394   :  { %v365_v24 = vmul.f32 %v662_v3, %v356_v23 }
 0x395   :  { %v622_v25 = vpop.f32.mrf.mxu1 }
 0x396   :  { %368 = vst.msk [vmem:[#allocation7] sm:$0xff] %vm122_vm0, %v365_v24 }
 0x397   :  { %v359_v27 = vpop.f32.mrf.mxu1 }
 0x398   :  { %v366_v28 = vmul.f32 %v664_v26, %v359_v27 }
 0x399   :  { %v623_v29 = vpop.f32.mrf.mxu1 }
 0x39a   :  { %369 = vst.msk [vmem:[#allocation7 + $0x8] sm:$0xff] %vm122_vm0, %v366_v28 }
 0x3d4   :  { %v468_v30 = vpop.permute.xlu1 %467 }
 0x3d5   :  { %474 = vst.msk [vmem:[#allocation7] sm:$0xff] %vm473_vm9, %v468_v30 }
 0x3d8   :  { %v470_v31 = vpop.permute.xlu0 %469 }
 0x3d9   :  { %475 = vst.msk [vmem:[#allocation7 + $0x8] sm:$0xff] %vm473_vm9, %v470_v31 }
 0x3dc   :  { %v476_v33 = vld [vmem:[#allocation7] sm:$0xff] }
 0x3dd   :  { %v485_v34 = vadd.f32 %v598_v32, %v476_v33 }
 0x3df   :  { %v489_v35 = vmin.f32 %v485_v34, 0.0  ;;  %vm487_vm10 = vcmp.gt.f32.partialorder %v485_v34, 0.0 }
 0x3e0   :  { %v477_v36 = vld [vmem:[#allocation7 + $0x8] sm:$0xff] }
 0x3e1   :  { %v486_v37 = vadd.f32 %v598_v32, %v477_v36  ;;  %v491_v38 = vmul.f32 1.442695, %v489_v35 }
 0x3e3   :  { %v490_v39 = vmin.f32 %v486_v37, 0.0  ;;  %665 = vpow2.f32 %v491_v38  ;;  %vm488_vm11 = vcmp.gt.f32.partialorder %v486_v37, 0.0 }
 0x3e5   :  { %v493_v40 = vmul.f32 1.442695, %v490_v39 }
 0x3e7   :  { %667 = vpow2.f32 %v493_v40 }
 0x3f0   :  { %v666_v41 = vpop.eup %665 }
 0x3f1   :  { %v599_v42 = vadd.f32 -1.0, %v666_v41 }
 0x3f3   :  { %v497_v46 = vsel %vm487_vm10, %v485_v34, %v599_v42 }
 0x3f4   :  { %v668_v43 = vpop.eup %667 }
 0x3f5   :  { %v600_v44 = vadd.f32 -1.0, %v668_v43 }
 0x3f7   :  { %v498_v47 = vsel %vm488_vm11, %v486_v37, %v600_v44 }
 0x3f8   :  { %v502_v48 = vpack.c.bf16 %v498_v47, %v497_v46 }
 0x3fa   :  { %631 = vmatpush3.bf16.msra.mxu1 %v502_v48 }
 0x3fd   :  { %633 = vmatmul.mubr.msk.bf16.vlgmr.msra.gmra.mxu1 %vm204_vm1, %v501_v49 }
 0x4bd   :  { %v540_v51 = vpop.f32.mrf.mxu1 }
 0x4be   :  { %v546_v52 = vadd.f32 %v540_v51, %v499_v50 }
 0x4bf   :  { %v634_v53 = vpop.f32.mrf.mxu1 }
 0x4c0   :  { %548 = vst.msk [vmem:[#allocation9] sm:$0x3] %vm247_vm3, %v546_v52 }
 0x4c1   :  { %v543_v54 = vpop.f32.mrf.mxu1 }
 0x4c2   :  { %680 = shalt.err (!%p677_p4)
}
 0x4c3   :  { %558 = dma.vmem_to_hbm [thread:$0]  %s556_s8, 32, %s801_s5, [#allocation10]   ;;  %v635_v55 = vpop.f32.mrf.mxu1 }
 0x4c4   :  { %693 = dma.done.wait [#allocation10], 32  }
 0x4c5   :  { %694 = vsyncadd [#allocation10], 4294967264 }
 0x4c6   :  { %562 = vsyncpa [#allocation10], 1 }
 0x4c7   :  { %563 = vsyncmov [#allocation8] }
 0x4ca   :  { %s564_s11 = vpop.sfrf %563 }
 0x4cb   :  { %p602_p5 = scmp.ne.s32.totalorder %s564_s11, 0 }
 0x4cd   :  { %568 = shalt.err (%p602_p5)  }
 0x4ce   :  { %570 = vsyncmov [#allocation8 + $0x1] }
 0x4d1   :  { %s571_s12 = vpop.sfrf %570 }
 0x4d2   :  { %p603_p6 = scmp.ne.s32.totalorder %s571_s12, 0 }
 0x4d4   :  { %575 = shalt.err (%p603_p6)  }

</bundles_post_ra>
